<compile_context>
chip_gen: v7x
topology: tpu7x:2x2x1
jax: 0.10.0
libtpu: 0.0.40
codegen_flags: <defaults>
</compile_context>

<pallas_src>
import jax
import jax.numpy as jnp
from jax.experimental import pallas as pl
from jax.experimental.pallas import tpu as pltpu


def _round_up(x, m):
    return ((x + m - 1) // m) * m


def linear_kernel(x_ref, wt_ref, b_ref, o_ref):
    # x_ref: (tile_b, K)  wt_ref: (K, N)  b_ref: (1, N)  o_ref: (tile_b, N)
    acc = jnp.dot(x_ref[...], wt_ref[...], preferred_element_type=jnp.float32)
    o_ref[...] = (acc + b_ref[...].astype(jnp.float32)).astype(o_ref.dtype)


def _pick_tile_b(batch, tile_b_max=4096, min_grid_steps=2):
    """Batch tile: multiple of 8 (f32 sublane), large enough to amortize the
    per-grid-step overhead, but split into >= min_grid_steps steps for v7x
    megacore sharding when the batch is big enough to be worth splitting."""
    tile_b = min(tile_b_max, _round_up(batch, 8))
    if batch >= 16 and -(-batch // tile_b) < min_grid_steps:
        tile_b = max(8, _round_up(-(-batch // min_grid_steps), 8))
    return tile_b


def logistic_regression_forward(x, weight, bias, *, tile_b_max=4096):
    """Pallas forward for LogisticRegression (nn.Linear semantics).

    x:      [batch, in_dim]   (row-major, as in PyTorch 2-D Linear input)
    weight: [out_dim, in_dim] (PyTorch convention)
    bias:   [out_dim]
    returns [batch, out_dim]
    """
    batch, in_dim = x.shape
    out_dim, _ = weight.shape

    tile_b = _pick_tile_b(batch, tile_b_max)
    grid = (pl.cdiv(batch, tile_b),)

    # Pre-transpose weight once (free XLA-side layout work; hoist out of the
    # per-call path if this wrapper is called repeatedly with the same weight).
    wt = weight.T                       # [in_dim, out_dim]
    bias2d = bias.reshape(1, out_dim)   # 2-D for a legal TPU block

    itemsize = jnp.dtype(x.dtype).itemsize
    cost = pl.CostEstimate(
        flops=2 * batch * in_dim * out_dim,
        transcendentals=0,
        bytes_accessed=(x.size + wt.size + bias2d.size + batch * out_dim) * itemsize,
    )

    # VMEM budget: double-buffered x and out tiles + resident W^T + bias,
    # with generous headroom; clamp so it is safe on v5e (16 MiB scoped
    # default) and well under v7x's 64 MiB physical VMEM.
    vmem_bytes = (
        2 * tile_b * in_dim * itemsize
        + 2 * tile_b * out_dim * itemsize
        + wt.size * itemsize
        + bias2d.size * itemsize
    )
    vmem_limit = int(min(max(4 * vmem_bytes, 8 << 20), 32 << 20))

    out = pl.pallas_call(
        linear_kernel,
        out_shape=jax.ShapeDtypeStruct((batch, out_dim), x.dtype),
        grid=grid,
        in_specs=[
            # x: tiled over batch; last dim == full in_dim (legal full-dim block).
            pl.BlockSpec((tile_b, in_dim), lambda i: (i, 0)),
            # W^T: whole (small) array, resident across all grid steps.
            pl.BlockSpec((in_dim, out_dim), lambda i: (0, 0)),
            # bias: whole array.
            pl.BlockSpec((1, out_dim), lambda i: (0, 0)),
        ],
        out_specs=pl.BlockSpec((tile_b, out_dim), lambda i: (i, 0)),
        compiler_params=pltpu.CompilerParams(
            dimension_semantics=("parallel",),
            vmem_limit_bytes=vmem_limit,
        ),
        cost_estimate=cost,
    )(x, wt, bias2d)

    return out


if __name__ == "__main__":
    # Titanic-style logistic regression: small feature vector -> 2 classes.
    # NOTE: at truly tiny batches a plain XLA dot beats the pallas_call launch;
    # we still run the Pallas kernel here to exercise/validate it.
    batch = 64
    input_dim = 7
    output_dim = 2

    key = jax.random.PRNGKey(0)
    kx, kw, kb = jax.random.split(key, 3)

    # Deterministic init matching nn.Linear default: U(-1/sqrt(in), 1/sqrt(in)).
    bound = 1.0 / jnp.sqrt(jnp.float32(input_dim))
    weight = jax.random.uniform(
        kw, (output_dim, input_dim), dtype=jnp.float32, minval=-bound, maxval=bound
    )
    bias = jax.random.uniform(
        kb, (output_dim,), dtype=jnp.float32, minval=-bound, maxval=bound
    )
    x = jax.random.normal(kx, (batch, input_dim), dtype=jnp.float32)

    out = logistic_regression_forward(x, weight, bias)
    out = jax.block_until_ready(out)

    # Sanity check against plain-JAX reference (nn.Linear semantics, no activation).
    ref = x @ weight.T + bias
    assert out.shape == (batch, output_dim)
    assert jnp.allclose(out, ref, atol=1e-5, rtol=1e-5)

    print("KERNEL_OK")
</pallas_src>

<mosaic_0001>
module attributes {stable_mosaic.version = 11 : i64} {
  func.func @linear_kernel(%arg0: i32, %arg1: memref<32x7xf32, #tpu.memory_space<vmem>>, %arg2: memref<7x2xf32, #tpu.memory_space<vmem>>, %arg3: memref<1x2xf32, #tpu.memory_space<vmem>>, %arg4: memref<32x2xf32, #tpu.memory_space<vmem>>) attributes {dimension_semantics = [#tpu.dimension_semantics<parallel>], iteration_bounds = array<i64: 2>, scalar_prefetch = 0 : i64, scratch_operands = 0 : i64, tpu.core_type = #tpu.core_type<tc>, window_params = [{transform_indices = @transform_0, window_bounds = array<i64: 32, 7>}, {pipeline_mode = #tpu.pipeline_mode<synchronous>, transform_indices = @transform_1, window_bounds = array<i64: 7, 2>}, {pipeline_mode = #tpu.pipeline_mode<synchronous>, transform_indices = @transform_2, window_bounds = array<i64: 1, 2>}, {transform_indices = @transform_3, window_bounds = array<i64: 32, 2>}]} {
    %c0 = arith.constant 0 : index
    %c0_0 = arith.constant 0 : index
    %0 = vector.load %arg1[%c0, %c0_0] : memref<32x7xf32, #tpu.memory_space<vmem>>, vector<32x7xf32>
    %c0_1 = arith.constant 0 : index
    %c0_2 = arith.constant 0 : index
    %1 = vector.load %arg2[%c0_1, %c0_2] : memref<7x2xf32, #tpu.memory_space<vmem>>, vector<7x2xf32>
    %cst = arith.constant dense<0.000000e+00> : vector<32x2xf32>
    %2 = tpu.matmul %0, %1, %cst {dimension_numbers = #tpu.dot_dimension_numbers<[1], [0], [0], [1], [0, 0, 1, 1], [], []>} : vector<32x7xf32>, vector<7x2xf32>, vector<32x2xf32> -> vector<32x2xf32>
    %c0_3 = arith.constant 0 : index
    %c0_4 = arith.constant 0 : index
    %3 = vector.load %arg3[%c0_3, %c0_4] : memref<1x2xf32, #tpu.memory_space<vmem>>, vector<1x2xf32>
    %4 = vector.broadcast %3 : vector<1x2xf32> to vector<32x2xf32>
    %5 = arith.addf %2, %4 : vector<32x2xf32>
    %c0_5 = arith.constant 0 : index
    %c0_6 = arith.constant 0 : index
    %6 = vector.load %arg4[%c0_5, %c0_6] : memref<32x2xf32, #tpu.memory_space<vmem>>, vector<32x2xf32>
    tpu.vector_store %arg4[%c0_5, %c0_6], %5 {strides = array<i32>} : memref<32x2xf32, #tpu.memory_space<vmem>>, vector<32x2xf32>,
    return
  }
  func.func @transform_0(%arg0: i32) -> (i32, i32) {
    %c0_i32 = arith.constant 0 : i32
    %c0_i32_0 = arith.constant 0 : i32
    return %arg0, %c0_i32 : i32, i32
  }
  func.func @transform_1(%arg0: i32) -> (i32, i32) {
    %c0_i32 = arith.constant 0 : i32
    %c0_i32_0 = arith.constant 0 : i32
    %c0_i32_1 = arith.constant 0 : i32
    return %c0_i32, %c0_i32_0 : i32, i32
  }
  func.func @transform_2(%arg0: i32) -> (i32, i32) {
    %c0_i32 = arith.constant 0 : i32
    %c0_i32_0 = arith.constant 0 : i32
    %c0_i32_1 = arith.constant 0 : i32
    return %c0_i32, %c0_i32_0 : i32, i32
  }
  func.func @transform_3(%arg0: i32) -> (i32, i32) {
    %c0_i32 = arith.constant 0 : i32
    %c0_i32_0 = arith.constant 0 : i32
    return %arg0, %c0_i32 : i32, i32
  }
}

</mosaic_0001>

<bundles_post_ra>
// kernel: tpu_custom_call.1
= control target key start
LH: loop header
LB: loop body
LE: loop exit
PB: predicated region body
PF: predicated region fallthrough
CT: control target
= control target key end

     0   :  { %s417_s12 = smov 0   ;;  %s440_s0 = inlined_call_operand.vmem [shape: f32[64,7], index: 0, kind: input, shape index: {}]   ;;  %s441_s1 = inlined_call_operand.vmem [shape: f32[7,2], index: 1, kind: input, shape index: {}]   ;;  %s442_s2 = inlined_call_operand.vmem [shape: f32[1,2], index: 2, kind: input, shape index: {}]   ;;  %s443_s3 = inlined_call_operand.vmem [shape: f32[64,2], index: 3, kind: output, shape index: {}]  }
   0x1 LB: > { %s349_s13 = sadd.s32 4294967295, %s395_s12   ;;  %p353_p0 = scmp.ge.s32.totalorder %s395_s12, 1  ;;  %s395_s12 = sphi %s417_s12, %s13_s12  }
   0x2   : > { %p138_p1 = scmp.lt.s32.totalorder %s395_s12, 3 }
   0x4   : > { %p139_p2 = pnand %p353_p0, %p138_p1 }
   0x5   : > { %v178_v0 = vld [vmem:[%s441_s1] sm:$0x7f] (!%p139_p2)  ;;  %vm199_vm0 = vcmask (!%p139_p2), 1046528   ;;  %s354_s16 = sshll.u32 (!%p139_p2), %s349_s13, 2  ;;  %vm186_vm1 = vcmask (!%p139_p2), 56320   ;;  %vm288_vm2 = vcmask (!%p139_p2), 15360  }
   0x6   : > { %142 = sbr.rel (%p139_p2) target bundleno = 234 (0xea), region = 32  ;;  %371 = vmatprep.subr.msk.mxu0 (!%p139_p2), %vm199_vm0, %v178_v0  ;;  %379 = vmatprep.subr.msk.mxu1 (!%p139_p2), %vm199_vm0, %v178_v0  ;;  %p163_p3 = scmp.lt.s32.totalorder (!%p139_p2), %s354_s16, 7  ;;  %v358_v5 = vld [vmem:[%s442_s2] ss:$0 sm:$0xff] (!%p139_p2) }
   0x7   : > { %372 = vmatpush3.msk.msra.mxu0 (!%p139_p2), %vm199_vm0, %v178_v0  ;;  %380 = vmatpush3.msk.msra.mxu1 (!%p139_p2), %vm199_vm0, %v178_v0 }
   0xd   : > { %s445_s16 = smov (!%p163_p3, %s354_s16), 7 }
   0xe   : > { %s355_s17 = sshll.u32 %s445_s16, 3 }
   0xf   : > { %s166_s20 = scalar_lea.vmem %s440_s0, %s355_s17  ;;  %s172_s25 = scalar_lea.vmem %s443_s3, %s355_s17 }
  0x10   : > { %v174_v1 = vld [vmem:[%s166_s20] sm:$0xff]  ;;  %v175_v2 = vld [vmem:[%s166_s20 + $0x8] sm:$0xff]  ;;  %v176_v3 = vld [vmem:[%s166_s20 + $0x10] sm:$0xff] }
  0x11   : > { %373 = vmatprep.mubr.msk.f32.mxu0 %vm186_vm1, %v174_v1  ;;  %376 = vmatprep.mubr.msk.f32.mxu1 %vm186_vm1, %v176_v3  ;;  %v177_v4 = vld [vmem:[%s166_s20 + $0x18] sm:$0xff] }
  0x12   : > { %374 = vmatmul.mubr.msk.f32.vlgmr.msra.gmra.mrb[0].mxu0 %vm186_vm1, %v175_v2  ;;  %377 = vmatmul.mubr.msk.f32.vlgmr.msra.gmra.mrb[0].mxu1 %vm186_vm1, %v177_v4 }
  0xe5   : > { %v375_v6 = vpop.f32.mrb[0].mxu0  ;;  %v378_v7 = vpop.f32.mrb[0].mxu1 }
  0xe6   : > { %v269_v8 = vpop.f32.mrb[1].mxu0  ;;  %v279_v9 = vpop.f32.mrb[1].mxu1  ;;  %v275_v12 = vadd.f32 %v375_v6, %v358_v5  ;;  %v285_v13 = vadd.f32 %v378_v7, %v358_v5 }
  0xe7   : > { %v270_v10 = vadd.f32 %v358_v5, %v269_v8  ;;  %v280_v11 = vadd.f32 %v358_v5, %v279_v9 }
  0xe8   : > { %290 = vst.msk [vmem:[%s172_s25 + $0x8] sm:$0xff] %vm288_vm2, %v275_v12  ;;  %292 = vst.msk [vmem:[%s172_s25 + $0x18] sm:$0xff] %vm288_vm2, %v285_v13 }
  0xe9   : > { %289 = vst.msk [vmem:[%s172_s25] sm:$0xff] %vm288_vm2, %v270_v10  ;;  %291 = vst.msk [vmem:[%s172_s25 + $0x10] sm:$0xff] %vm288_vm2, %v280_v11 }
  0xea PF: > { %s13_s12 = sadd.s32 1, %s395_s12  }
  0xeb   : > { %p10_p4 = scmp.ge.s32.totalorder %s13_s12, 4  }
  0xed   :  { %12 = sbr.rel (!%p10_p4) target bundleno = 1 (0x1), region = 62 }

</bundles_post_ra>
